<compile_context>
chip_gen: v7x
topology: tpu7x:2x2x1
jax: 0.10.0
libtpu: 0.0.40
codegen_flags: <defaults>
</compile_context>

<pallas_src>
import functools

import jax
import jax.numpy as jnp
from jax.experimental import pallas as pl
from jax.experimental.pallas import tpu as pltpu


def _round_up(x, m):
    return ((x + m - 1) // m) * m


def _largest_dividing_tile(total, max_tile, quantum):
    """Largest multiple of `quantum` <= max_tile that divides `total`.
    `total` must itself be a multiple of `quantum`."""
    if total <= max_tile:
        return total
    tile = (max_tile // quantum) * quantum
    while tile > quantum and total % tile:
        tile -= quantum
    return tile


def _conv_bn_act_kernel(x_ref, w_ref, b_ref, o_ref, acc_ref, *, neg_slope):
    # x_ref   : (1, TM, TK)   bf16 im2col tile for one batch element
    # w_ref   : (TK, TN)      bf16 BN-scale-folded weights
    # b_ref   : (1, TN)       f32 folded BN bias
    # o_ref   : (1, TM, TN)   f32 output tile
    # acc_ref : (TM, TN)      f32 VMEM accumulator (persists across K steps)
    ki = pl.program_id(3)

    @pl.when(ki == 0)
    def _init():
        acc_ref[...] = jnp.zeros_like(acc_ref)

    acc_ref[...] += jnp.dot(x_ref[0], w_ref[...], preferred_element_type=jnp.float32)

    @pl.when(ki == pl.num_programs(3) - 1)
    def _finalize():
        y = acc_ref[...] + b_ref[...]          # BatchNorm (scale folded into weights)
        y = jnp.maximum(y, neg_slope * y)      # LeakyReLU(0.1) / ReLU (neg_slope=0)
        o_ref[0] = y.astype(o_ref.dtype)


def conv_layer_forward(x_nchw, weight_oihw, gamma, beta, running_mean, running_var,
                       *, kernel, stride=1, activation_func="leakyrelu", eps=1e-5):
    """Forward pass of ConvLayer. Returns NCHW output, float32."""
    neg_slope = 0.1 if activation_func == "leakyrelu" else 0.0

    N, C_in, H, W = x_nchw.shape
    C_out = weight_oihw.shape[0]
    KH = KW = kernel

    x = jnp.transpose(x_nchw, (0, 2, 3, 1)).astype(jnp.float32)  # NCHW -> NHWC
    if stride > 1:
        # nn.ZeroPad2d((1, 0, 1, 0)) == (left=1, right=0, top=1, bottom=0), conv pad=0
        x = jnp.pad(x, ((0, 0), (1, 0), (1, 0), (0, 0)))
    else:
        p = (kernel - 1) // 2
        x = jnp.pad(x, ((0, 0), (p, p), (p, p), (0, 0)))

    Hp, Wp = x.shape[1], x.shape[2]
    H_out = (Hp - KH) // stride + 1
    W_out = (Wp - KW) // stride + 1
    M = H_out * W_out
    T = KH * KW
    K = T * C_in

    # im2col slab (N, M, K) — taps concatenated along the channel axis (kh, kw, c order).
    taps = []
    for kh in range(KH):
        for kw in range(KW):
            taps.append(x[:, kh:kh + stride * H_out:stride,
                          kw:kw + stride * W_out:stride, :])
    xim = jnp.concatenate(taps, axis=-1).reshape(N, M, K)

    # Fold BatchNorm (eval-mode / running statistics) into the weights + a bias.
    # TODO(synk): training-mode BatchNorm (batch statistics) not implemented.
    scale = (gamma / jnp.sqrt(running_var + eps)).astype(jnp.float32)
    bias = (beta - running_mean * scale).astype(jnp.float32)

    # OIHW -> (KH, KW, C_in, C_out) -> (K, C_out); fold scale per output channel.
    w = jnp.transpose(weight_oihw, (2, 3, 1, 0)).reshape(K, C_out).astype(jnp.float32)
    w = w * scale[None, :]

    # --- Tiling / padding (lane-dense last dims, (8,128)-aligned tiles). ---
    TM_MAX, TN_MAX, TK_MAX = 512, 256, 2048
    M8 = _round_up(M, 8)
    if M8 <= TM_MAX:
        TM, M_pad = M8, M8
    else:
        TM = TM_MAX
        M_pad = _round_up(M, TM)
    K_pad = _round_up(K, 128)
    TK = _largest_dividing_tile(K_pad, TK_MAX, 128)
    Co_pad = _round_up(C_out, 128)
    TN = _largest_dividing_tile(Co_pad, TN_MAX, 128)

    xim = jnp.pad(xim, ((0, 0), (0, M_pad - M), (0, K_pad - K))).astype(jnp.bfloat16)
    w = jnp.pad(w, ((0, K_pad - K), (0, Co_pad - C_out))).astype(jnp.bfloat16)
    bias2 = jnp.pad(bias, (0, Co_pad - C_out)).reshape(1, Co_pad)

    grid = (N, M_pad // TM, Co_pad // TN, K_pad // TK)

    flops = int(2 * N * M_pad * K_pad * Co_pad)
    bytes_accessed = int(xim.size * 2 + w.size * 2 + bias2.size * 4
                         + N * M_pad * Co_pad * 4)

    kern = functools.partial(_conv_bn_act_kernel, neg_slope=neg_slope)
    out = pl.pallas_call(
        kern,
        out_shape=jax.ShapeDtypeStruct((N, M_pad, Co_pad), jnp.float32),
        grid=grid,
        in_specs=[
            pl.BlockSpec((1, TM, TK), lambda n, mi, ni, ki: (n, mi, ki)),
            pl.BlockSpec((TK, TN), lambda n, mi, ni, ki: (ki, ni)),
            pl.BlockSpec((1, TN), lambda n, mi, ni, ki: (0, ni)),
        ],
        out_specs=pl.BlockSpec((1, TM, TN), lambda n, mi, ni, ki: (n, mi, ni)),
        scratch_shapes=[pltpu.VMEM((TM, TN), jnp.float32)],
        compiler_params=pltpu.CompilerParams(
            dimension_semantics=("parallel", "parallel", "parallel", "arbitrary")),
        cost_estimate=pl.CostEstimate(flops=flops, transcendentals=0,
                                      bytes_accessed=bytes_accessed),
    )(xim, w, bias2)

    out = out[:, :M, :C_out].reshape(N, H_out, W_out, C_out)
    return jnp.transpose(out, (0, 3, 1, 2))  # NHWC -> NCHW


def _reference(x, w, gamma, beta, mean, var, *, kernel, stride, neg_slope, eps=1e-5):
    """Pure-JAX f32 reference matching the PyTorch module (eval-mode BN)."""
    if stride > 1:
        xp = jnp.pad(x, ((0, 0), (0, 0), (1, 0), (1, 0)))
        padding = "VALID"
    else:
        p = (kernel - 1) // 2
        xp = x
        padding = [(p, p), (p, p)]
    y = jax.lax.conv_general_dilated(
        xp, w, window_strides=(stride, stride), padding=padding,
        dimension_numbers=("NCHW", "OIHW", "NCHW"))
    scale = gamma / jnp.sqrt(var + eps)
    bias = beta - mean * scale
    y = y * scale[None, :, None, None] + bias[None, :, None, None]
    return jnp.maximum(y, neg_slope * y)


if __name__ == "__main__":
    key = jax.random.PRNGKey(0)
    k1, k2, k3, k4, k5, k6 = jax.random.split(key, 6)

    N, C_in, H, W = 2, 4, 16, 16
    C_out, kernel = 8, 3

    x = jax.random.normal(k1, (N, C_in, H, W), jnp.float32)
    weight = 0.1 * jax.random.normal(k2, (C_out, C_in, kernel, kernel), jnp.float32)
    gamma = 1.0 + 0.1 * jax.random.normal(k3, (C_out,), jnp.float32)
    beta = 0.1 * jax.random.normal(k4, (C_out,), jnp.float32)
    running_mean = 0.1 * jax.random.normal(k5, (C_out,), jnp.float32)
    running_var = jax.random.uniform(k6, (C_out,), jnp.float32, minval=0.5, maxval=1.5)

    for stride in (1, 2):
        out = conv_layer_forward(
            x, weight, gamma, beta, running_mean, running_var,
            kernel=kernel, stride=stride, activation_func="leakyrelu",
        )
        out = jax.block_until_ready(out)
        ref = _reference(x, weight, gamma, beta, running_mean, running_var,
                         kernel=kernel, stride=stride, neg_slope=0.1)
        assert out.shape == ref.shape, (out.shape, ref.shape)
        err = float(jnp.max(jnp.abs(out - ref)))
        assert err < 5e-2, f"stride={stride} max abs err {err}"

    print("KERNEL_OK")
</pallas_src>

<mosaic_0001>
module attributes {stable_mosaic.version = 11 : i64} {
  func.func @_conv_bn_act_kernel(%arg0: i32, %arg1: i32, %arg2: i32, %arg3: i32, %arg4: memref<1x256x128xbf16, #tpu.memory_space<vmem>>, %arg5: memref<128x128xbf16, #tpu.memory_space<vmem>>, %arg6: memref<1x128xf32, #tpu.memory_space<vmem>>, %arg7: memref<1x256x128xf32, #tpu.memory_space<vmem>>, %arg8: memref<256x128xf32, #tpu.memory_space<vmem>>) attributes {dimension_semantics = [#tpu.dimension_semantics<parallel>, #tpu.dimension_semantics<parallel>, #tpu.dimension_semantics<parallel>, #tpu.dimension_semantics<arbitrary>], iteration_bounds = array<i64: 2, 1, 1, 1>, scalar_prefetch = 0 : i64, scratch_operands = 1 : i64, tpu.core_type = #tpu.core_type<tc>, window_params = [{transform_indices = @transform_0, window_bounds = array<i64: 1, 256, 128>}, {transform_indices = @transform_1, window_bounds = array<i64: 128, 128>}, {transform_indices = @transform_2, window_bounds = array<i64: 1, 128>}, {transform_indices = @transform_3, window_bounds = array<i64: 1, 256, 128>}]} {
    %c0_i32 = arith.constant 0 : i32
    %0 = arith.cmpi eq, %arg3, %c0_i32 : i32
    %1 = arith.extui %0 : i1 to i32
    %c0_i32_0 = arith.constant 0 : i32
    %2 = arith.cmpi ne, %1, %c0_i32_0 : i32
    scf.if %2 {
      %cst_11 = arith.constant 0.000000e+00 : f32
      %13 = vector.broadcast %cst_11 : f32 to vector<256x128xf32>
      %c0_12 = arith.constant 0 : index
      %c0_13 = arith.constant 0 : index
      %14 = vector.load %arg8[%c0_12, %c0_13] : memref<256x128xf32, #tpu.memory_space<vmem>>, vector<256x128xf32>
      tpu.vector_store %arg8[%c0_12, %c0_13], %13 {strides = array<i32>} : memref<256x128xf32, #tpu.memory_space<vmem>>, vector<256x128xf32>,
    } else {
    }
    %c0 = arith.constant 0 : index
    %c0_1 = arith.constant 0 : index
    %3 = vector.load %arg8[%c0, %c0_1] : memref<256x128xf32, #tpu.memory_space<vmem>>, vector<256x128xf32>
    %c0_2 = arith.constant 0 : index
    %c0_3 = arith.constant 0 : index
    %c0_4 = arith.constant 0 : index
    %4 = vector.load %arg4[%c0_2, %c0_3, %c0_4] : memref<1x256x128xbf16, #tpu.memory_space<vmem>>, vector<1x256x128xbf16>
    %5 = vector.shape_cast %4 : vector<1x256x128xbf16> to vector<256x128xbf16>
    %c0_5 = arith.constant 0 : index
    %c0_6 = arith.constant 0 : index
    %6 = vector.load %arg5[%c0_5, %c0_6] : memref<128x128xbf16, #tpu.memory_space<vmem>>, vector<128x128xbf16>
    %cst = arith.constant dense<0.000000e+00> : vector<256x128xf32>
    %7 = tpu.matmul %5, %6, %cst {dimension_numbers = #tpu.dot_dimension_numbers<[1], [0], [0], [1], [0, 0, 1, 1], [], []>} : vector<256x128xbf16>, vector<128x128xbf16>, vector<256x128xf32> -> vector<256x128xf32>
    %8 = arith.addf %3, %7 : vector<256x128xf32>
    %c0_7 = arith.constant 0 : index
    %c0_8 = arith.constant 0 : index
    %9 = vector.load %arg8[%c0_7, %c0_8] : memref<256x128xf32, #tpu.memory_space<vmem>>, vector<256x128xf32>
    tpu.vector_store %arg8[%c0_7, %c0_8], %8 {strides = array<i32>} : memref<256x128xf32, #tpu.memory_space<vmem>>, vector<256x128xf32>,
    %c0_i32_9 = arith.constant 0 : i32
    %10 = arith.cmpi eq, %arg3, %c0_i32_9 : i32
    %11 = arith.extui %10 : i1 to i32
    %c0_i32_10 = arith.constant 0 : i32
    %12 = arith.cmpi ne, %11, %c0_i32_10 : i32
    scf.if %12 {
      %c0_11 = arith.constant 0 : index
      %c0_12 = arith.constant 0 : index
      %13 = vector.load %arg8[%c0_11, %c0_12] : memref<256x128xf32, #tpu.memory_space<vmem>>, vector<256x128xf32>
      %c0_13 = arith.constant 0 : index
      %c0_14 = arith.constant 0 : index
      %14 = vector.load %arg6[%c0_13, %c0_14] : memref<1x128xf32, #tpu.memory_space<vmem>>, vector<1x128xf32>
      %15 = vector.broadcast %14 : vector<1x128xf32> to vector<256x128xf32>
      %16 = arith.addf %13, %15 : vector<256x128xf32>
      %cst_15 = arith.constant 1.000000e-01 : f32
      %17 = vector.broadcast %cst_15 : f32 to vector<256x128xf32>
      %18 = arith.mulf %17, %16 : vector<256x128xf32>
      %19 = arith.maximumf %16, %18 : vector<256x128xf32>
      %c0_16 = arith.constant 0 : index
      %c0_17 = arith.constant 0 : index
      %c0_18 = arith.constant 0 : index
      %20 = vector.load %arg7[%c0_16, %c0_17, %c0_18] : memref<1x256x128xf32, #tpu.memory_space<vmem>>, vector<1x256x128xf32>
      %21 = vector.shape_cast %20 : vector<1x256x128xf32> to vector<256x128xf32>
      %22 = vector.shape_cast %19 : vector<256x128xf32> to vector<1x256x128xf32>
      tpu.vector_store %arg7[%c0_16, %c0_17, %c0_18], %22 {strides = array<i32>} : memref<1x256x128xf32, #tpu.memory_space<vmem>>, vector<1x256x128xf32>,
    } else {
    }
    return
  }
  func.func @transform_0(%arg0: i32, %arg1: i32, %arg2: i32, %arg3: i32) -> (i32, i32, i32) {
    %c0_i32 = arith.constant 0 : i32
    return %arg0, %arg1, %arg3 : i32, i32, i32
  }
  func.func @transform_1(%arg0: i32, %arg1: i32, %arg2: i32, %arg3: i32) -> (i32, i32) {
    %c0_i32 = arith.constant 0 : i32
    return %arg3, %arg2 : i32, i32
  }
  func.func @transform_2(%arg0: i32, %arg1: i32, %arg2: i32, %arg3: i32) -> (i32, i32) {
    %c0_i32 = arith.constant 0 : i32
    %c0_i32_0 = arith.constant 0 : i32
    return %c0_i32, %arg2 : i32, i32
  }
  func.func @transform_3(%arg0: i32, %arg1: i32, %arg2: i32, %arg3: i32) -> (i32, i32, i32) {
    %c0_i32 = arith.constant 0 : i32
    return %arg0, %arg1, %arg2 : i32, i32, i32
  }
}

</mosaic_0001>

<bundles_post_ra>
// kernel: tpu_custom_call.1
= control target key start
LH: loop header
LB: loop body
LE: loop exit
PB: predicated region body
PF: predicated region fallthrough
CT: control target
= control target key end

     0   :  { %8 = vsyncpa [#allocation4], 0  ;;  %s1786_s0 = inlined_call_operand.hbm [shape: bf16[2,256,128], index: 0, kind: input, shape index: {}]   ;;  %s1787_s1 = inlined_call_operand.hbm [shape: bf16[128,128], index: 1, kind: input, shape index: {}]   ;;  %s1788_s2 = inlined_call_operand.vmem [shape: f32[1,128], index: 2, kind: input, shape index: {}]   ;;  %s1789_s3 = inlined_call_operand.hbm [shape: f32[2,256,128], index: 3, kind: output, shape index: {}]  }
   0x1   :  { %10 = vsyncpa [#allocation4 + $0x1], 0 }
   0x2   :  { %11 = vsyncpa [#allocation7], 0 }
   0x3   :  { %12 = vsyncpa [#allocation5], 0 }
   0x4   :  { %14 = vsyncpa [#allocation5 + $0x1], 0  ;;  %s1470_s12 = smov 0   ;;  %s1472_s13 = smov 0  }
   0x5   :  { %s1474_s14 = smov 0   ;;  %s1476_s15 = smov 0  }
   0x6   :  { %s1478_s16 = smov 0   ;;  %s1480_s17 = smov 0  }
   0x7 LB: > { %s1063_s18 = sadd.s32 4294967295, %s1441_s17   ;;  %s1064_s19 = sadd.s32 4294967294, %s1441_s17   ;;  %s1441_s17 = sphi %s1480_s17, %s20_s17   ;;  %s1437_s16 = sphi %s1478_s16, %s1813_s16   ;;  %s1433_s15 = sphi %s1476_s15, %s1812_s15   ;;  %s1429_s14 = sphi %s1474_s14, %s1811_s14   ;;  %s1425_s13 = sphi %s1472_s13, %s1810_s13   ;;  %s1421_s12 = sphi %s1470_s12, %s1809_s12  }
   0x8   : > { %p70_p0 = scmp.ne.s32.totalorder %s1425_s13, %s1421_s12  ;;  %p1504_p1 = scmp.eq.s32.totalorder %s1063_s18, 0 }
   0x9   : > { %p1508_p2 = scmp.eq.s32.totalorder %s1063_s18, 1  ;;  %p158_p3 = scmp.eq.s32.totalorder %s1064_s19, 1 }
   0xa   : > { %s1794_s20 = scalar_select %p1504_p1, 1, 0 }
   0xb   : > { %s1795_s21 = scalar_select %p1508_p2, 1, 0 }
   0xc   : > { %p1514_p4 = por %p1504_p1, %p70_p0  ;;  %p1065_p5 = scmp.ge.s32.totalorder %s1441_s17, 1 }
   0xd   : > { %p1519_p6 = por %p158_p3, %p70_p0  ;;  %p165_p7 = scmp.lt.s32.totalorder %s1441_s17, 3 }
   0xe   : > { %s1796_s22 = scalar_select %p1514_p4, 1, 0 }
   0xf   : > { %s1797_s23 = scalar_select %p1519_p6, 1, 0 }
  0x10   : > { %p1524_p8 = pnand %p1065_p5, %p165_p7  ;;  %s1443_s25 = smov [#allocation6]  }
  0x11   : > { %s181_s26 = sshll.u32 %s1443_s25, 4  ;;  %s46_s28 = sadd.s32 1, %s1437_s16  ;;  %s182_s26 = int_to_ptr.vmem [resolvable:$true] %s181_s26 }
  0x12   : > { %s1798_s24 = scalar_select %p1524_p8, 1, 0 }
  0x13   : > { %p1204_p9 = pneg %p1524_p8  ;;  %s1297_s4 = scalar_lea.hbm %s1787_s1, 1024 }
  0x14   : > { %p1298_p12 = scmp.ne.s32.totalorder %s1787_s1, %s1297_s4  ;;  %p1304_p5 = scmp.lt.u32.totalorder %s1297_s4, %s1787_s1 }
  0x15   : > { %p1533_p11 = pnand %p1204_p9, %p1504_p1 }
  0x17   : > { %p1299_p13 = pneg %p1533_p11 }
  0x19   : > { %p1300_p0 = pnand %p1299_p13, %p1298_p12 }
  0x1b   : > { %p1301_p3 = pneg %p1300_p0 }
  0x1d   : > { %p1306_p7 = pnand %p1304_p5, %p1301_p3 }
  0x1f   : > { %1309 = shalt.err (!%p1306_p7)
}
  0x20   : > { %s1310_s9 = scalar_lea.vmem %s182_s26, 1024  ;;  %p1318_p1 = scmp.lt.s32.totalorder %s182_s26, %s182_s26 }
  0x21   : > { %p1311_p9 = scmp.ne.s32.totalorder %s182_s26, %s1310_s9  ;;  %p1319_p4 = scmp.lt.s32.totalorder %s1310_s9, %s1310_s9 }
  0x23   : > { %p1313_p10 = pnand %p1311_p9, %p1299_p13  ;;  %p1320_p8 = por %p1319_p4, %p1318_p1 }
  0x25   : > { %p1314_p6 = pneg %p1313_p10 }
  0x27   : > { %p1321_p2 = pnand %p1320_p8, %p1314_p6 }
  0x29   : > { %1324 = shalt.err (!%p1321_p2)
}
  0x2a   : > { %s1444_s10 = smov 64   ;;  %s1445_s11 = smov 4  }
  0x2b   : > { %1207 = dma.hbm_to_vmem [thread:$0]  (!%p1533_p11), %s1787_s1, 1024, %s182_s26, [#allocation7], %s1444_s10, %s1444_s10, %s1445_s11  }
  0x2c   : > { %p48_p1 = scmp.ge.s32.totalorder %s46_s28, 2  ;;  %s57_s25 = sadd.s32 1, %s1429_s14 }
  0x2d   : > { %p64_p2 = scmp.ne.s32.totalorder %s1429_s14, %s1425_s13  ;;  %p65_p4 = scmp.eq.s32.totalorder %s1441_s17, 0 }
  0x2e   : > { %s1815_s28 = smov (%p48_p1, %s46_s28), 0  ;;  %p1801_p8 = scmp.ne.s32.totalorder %s1795_s21, 0 }
  0x2f   : > { %p1563_p6 = por %p65_p4, %p64_p2  ;;  %s50_s30 = ssub.s32 %s1437_s16, %s1815_s28 }
  0x30   : > { %p1569_p10 = por %p1801_p8, %p64_p2  ;;  %p1217_p12 = scmp.lt.s32.totalorder %s1441_s17, 2 }
  0x31   : > { %p55_p11 = scmp.eq.s32.totalorder %s50_s30, 0  ;;  %s201_s26 = sand.u32 1, %s1429_s14  }
  0x32   : > { %s1069_s4 = sshll.u32 %s201_s26, 7  ;;  %s1106_s6 = sshll.u32 %s1437_s16, 11 }
  0x33   : > { %s1578_s5 = scalar_select %p55_p11, %s1429_s14, %s57_s25  }
  0x34   : > { %s1584_s9 = scalar_lea.hbm %s1786_s0, %s1106_s6  ;;  %s205_s21 = scalar_lea.vmem [#allocation3], %s1069_s4 }
  0x35   : > { %s215_s18 = sshll.u32 %s205_s21, 4  ;;  %p1590_p13 = pnand %p1217_p12, %p1563_p6  ;;  %s1586_s18 = int_to_ptr.vmem [resolvable:$true] %s215_s18 }
  0x36   : > { %s1594_s25 = scalar_lea.sflag [#allocation4], %s201_s26  ;;  %s1325_s30 = scalar_lea.hbm %s1584_s9, 2048 }
  0x37   : > { %p1326_p0 = scmp.ne.s32.totalorder %s1584_s9, %s1325_s30  ;;  %p1327_p3 = pneg %p1590_p13 }
  0x38   : > { %s1330_s29 = scalar_lea.hbm %s1786_s0, 4096  ;;  %p1331_p9 = scmp.lt.u32.totalorder %s1584_s9, %s1786_s0 }
  0x39   : > { %p1328_p5 = pnand %p1327_p3, %p1326_p0  ;;  %p1332_p1 = scmp.lt.u32.totalorder %s1330_s29, %s1325_s30 }
  0x3a   : > { %p1334_p4 = scmp.lt.u32.totalorder %s1325_s30, %s1584_s9 }
  0x3b   : > { %p1329_p7 = pneg %p1328_p5  ;;  %p1333_p2 = por %p1332_p1, %p1331_p9 }
  0x3d   : > { %p1335_p6 = por %p1334_p4, %p1333_p2 }
  0x3f   : > { %p1336_p8 = pnand %p1335_p6, %p1329_p7 }
  0x41   : > { %1339 = shalt.err (!%p1336_p8)
}
  0x42   : > { %s1340_s26 = scalar_lea.vmem %s1586_s18, 2048  ;;  %s1446_s21 = smov [#allocation3]  }
  0x43   : > { %p1341_p12 = scmp.ne.s32.totalorder %s1586_s18, %s1340_s26  ;;  %s1345_s4 = sshll.u32 %s1446_s21, 4  ;;  %s1346_s4 = int_to_ptr.vmem [resolvable:$false] %s1345_s4 }
  0x44   : > { %s1347_s6 = scalar_lea.vmem %s1346_s4, 4096  ;;  %p1348_p5 = scmp.lt.s32.totalorder %s1586_s18, %s1346_s4 }
  0x45   : > { %p1343_p11 = pnand %p1341_p12, %p1327_p3  ;;  %p1349_p9 = scmp.lt.s32.totalorder %s1347_s6, %s1340_s26 }
  0x47   : > { %p1344_p0 = pneg %p1343_p11  ;;  %p1350_p1 = por %p1349_p9, %p1348_p5 }
  0x49   : > { %p1351_p2 = pnand %p1350_p1, %p1344_p0 }
  0x4b   : > { %1354 = shalt.err (!%p1351_p2)
}
  0x4c   : > { %1211 = dma.hbm_to_vmem [thread:$0]  (!%p1590_p13), %s1584_s9, 2048, %s1586_s18, %s1594_s25, %s1444_s10, %s1444_s10, %s1445_s11  }
  0x4d   : > { %p1804_p3 = scmp.ne.s32.totalorder %s1798_s24, 0 }
  0x4e   : > { %s1628_s30 = sand.u32 (!%p1804_p3), 1, %s1425_s13   ;;  %p1805_p7 = scmp.ne.s32.totalorder (!%p1804_p3), %s1796_s22, 0 }
  0x4f   : > { %227 = sbr.rel (%p1804_p3) target bundleno = 383 (0x17f), region = 32  ;;  %s1073_s29 = sshll.u32 (!%p1804_p3), %s1628_s30, 7 }
  0x50   : > { %s230_s7 = scalar_lea.sflag (!%p1804_p3), [#allocation4], %s1628_s30  ;;  %s1632_s8 = scalar_lea.vmem (!%p1804_p3), [#allocation3], %s1073_s29 }
  0x56   : > { %1408 = dma.done.wait (%p1805_p7), %s230_s7, 2048  }
  0x57   : > { %1410 = vsyncadd (%p1805_p7), %s230_s7, 4294965248  ;;  %p1806_p13 = scmp.ne.s32.totalorder %s1794_s20, 0 }
  0x59   : > { %1412 = dma.done.wait (%p1806_p13), [#allocation7], 1024  }
  0x5a   : > { %1414 = vsyncadd (%p1806_p13), [#allocation7], 4294966272  ;;  %v1273_v0 = vld [vmem:[#allocation6] sm:$0xff]   ;;  %v1274_v1 = vld [vmem:[#allocation6 + $0x8] sm:$0xff]   ;;  %s1075_s24 = sshll.u32 %s1628_s30, 8  ;;  %s1107_s11 = sshll.u32 %s1433_s15, 12 }
  0x5b   : > { %1132 = vmatprep.subr.bf16.mxu0 %v1273_v0  ;;  %1180 = vmatprep.subr.bf16.mxu1 %v1273_v0  ;;  %v1275_v2 = vld [vmem:[#allocation6 + $0x10] sm:$0xff]   ;;  %v1276_v3 = vld [vmem:[#allocation6 + $0x18] sm:$0xff]   ;;  %v1281_v4 = vld [vmem:[%s1632_s8] sm:$0xff]   ;;  %s1672_s10 = scalar_lea.vmem [#allocation8], %s1075_s24  ;;  %s1729_s19 = scalar_lea.hbm %s1789_s3, %s1107_s11 }
  0x5c   : > { %1133 = vmatpush3.bf16.msra.mxu0 %v1273_v0  ;;  %1188 = vmatpush3.bf16.msra.mxu1 %v1273_v0  ;;  %v1282_v5 = vld [vmem:[%s1632_s8 + $0x40] sm:$0xff]   ;;  %v1278_v7 = vld [vmem:[#allocation6 + $0x28] sm:$0xff]   ;;  %v1279_v8 = vld [vmem:[#allocation6 + $0x30] sm:$0xff]   ;;  %s942_s9 = sshll.u32 %s1672_s10, 4  ;;  %s926_s25 = scalar_lea.sflag [#allocation5], %s1628_s30  ;;  %s1731_s9 = int_to_ptr.vmem [resolvable:$true] %s942_s9 }
  0x5d   : > { %1134 = vmatprep.subr.bf16.mxu0 %v1274_v1  ;;  %1181 = vmatprep.subr.bf16.mxu1 %v1274_v1  ;;  %v1277_v6 = vld [vmem:[#allocation6 + $0x20] sm:$0xff]   ;;  %v1280_v9 = vld [vmem:[#allocation6 + $0x38] sm:$0xff]   ;;  %v1283_v10 = vld [vmem:[%s1632_s8 + $0x8] sm:$0xff]   ;;  %s1355_s26 = scalar_lea.vmem %s1731_s9, 4096  ;;  %s1447_s21 = smov [#allocation8]  }
  0x5e   : > { %1148 = vmatprep.mubr.bf16.mxu0 %v1281_v4  ;;  %1164 = vmatprep.mubr.bf16.mxu1 %v1282_v5  ;;  %v1284_v11 = vld [vmem:[%s1632_s8 + $0x48] sm:$0xff]   ;;  %v1285_v12 = vld [vmem:[%s1632_s8 + $0x10] sm:$0xff]   ;;  %v1287_v14 = vld [vmem:[%s1632_s8 + $0x18] sm:$0xff]   ;;  %p1356_p4 = scmp.ne.s32.totalorder %s1731_s9, %s1355_s26  ;;  %s1359_s4 = sshll.u32 %s1447_s21, 4  ;;  %s1360_s4 = int_to_ptr.vmem [resolvable:$false] %s1359_s4 }
  0x5f   : > { %v1286_v13 = vld [vmem:[%s1632_s8 + $0x50] sm:$0xff]   ;;  %v1288_v15 = vld [vmem:[%s1632_s8 + $0x58] sm:$0xff]   ;;  %v1289_v16 = vld [vmem:[%s1632_s8 + $0x20] sm:$0xff]   ;;  %s1361_s6 = scalar_lea.vmem %s1360_s4, 8192  ;;  %p1362_p12 = scmp.lt.s32.totalorder %s1731_s9, %s1360_s4 }
  0x60   : > { %1135 = vmatpush3.bf16.msra.mxu0 %v1274_v1  ;;  %1189 = vmatpush3.bf16.msra.mxu1 %v1274_v1  ;;  %v1290_v17 = vld [vmem:[%s1632_s8 + $0x60] sm:$0xff]   ;;  %v1291_v18 = vld [vmem:[%s1632_s8 + $0x28] sm:$0xff]   ;;  %v1293_v20 = vld [vmem:[%s1632_s8 + $0x30] sm:$0xff]   ;;  %p1357_p6 = pnand %p1356_p4, %p1569_p10  ;;  %p1363_p11 = scmp.lt.s32.totalorder %s1361_s6, %s1355_s26 }
  0x61   : > { %1136 = vmatprep.subr.bf16.mxu0 %v1275_v2  ;;  %1182 = vmatprep.subr.bf16.mxu1 %v1275_v2  ;;  %v1292_v19 = vld [vmem:[%s1632_s8 + $0x68] sm:$0xff]   ;;  %v1294_v21 = vld [vmem:[%s1632_s8 + $0x70] sm:$0xff]   ;;  %v1295_v22 = vld [vmem:[%s1632_s8 + $0x38] sm:$0xff]  }
  0x62   : > { %v1296_v23 = vld [vmem:[%s1632_s8 + $0x78] sm:$0xff]   ;;  %v1661_v24 = vld [vmem:[%s1788_s2] ss:$0 sm:$0xff]  ;;  %p1358_p8 = pneg %p1357_p6  ;;  %p1364_p0 = por %p1363_p11, %p1362_p12 }
  0x64   : > { %1137 = vmatpush3.bf16.msra.mxu0 %v1275_v2  ;;  %1190 = vmatpush3.bf16.msra.mxu1 %v1275_v2  ;;  %p1365_p5 = pnand %p1364_p0, %p1358_p8 }
  0x65   : > { %1138 = vmatprep.subr.bf16.mxu0 %v1276_v3  ;;  %1183 = vmatprep.subr.bf16.mxu1 %v1276_v3 }
  0x68   : > { %1139 = vmatpush3.bf16.msra.mxu0 %v1276_v3  ;;  %1191 = vmatpush3.bf16.msra.mxu1 %v1276_v3 }
  0x69   : > { %1140 = vmatprep.subr.bf16.mxu0 %v1277_v6  ;;  %1184 = vmatprep.subr.bf16.mxu1 %v1277_v6 }
  0x6c   : > { %1141 = vmatpush3.bf16.msra.mxu0 %v1277_v6  ;;  %1192 = vmatpush3.bf16.msra.mxu1 %v1277_v6 }
  0x6d   : > { %1142 = vmatprep.subr.bf16.mxu0 %v1278_v7  ;;  %1185 = vmatprep.subr.bf16.mxu1 %v1278_v7 }
  0x70   : > { %1143 = vmatpush3.bf16.msra.mxu0 %v1278_v7  ;;  %1193 = vmatpush3.bf16.msra.mxu1 %v1278_v7 }
  0x71   : > { %1144 = vmatprep.subr.bf16.mxu0 %v1279_v8  ;;  %1186 = vmatprep.subr.bf16.mxu1 %v1279_v8 }
  0x74   : > { %1145 = vmatpush3.bf16.msra.mxu0 %v1279_v8  ;;  %1194 = vmatpush3.bf16.msra.mxu1 %v1279_v8 }
  0x75   : > { %1146 = vmatprep.subr.bf16.mxu0 %v1280_v9  ;;  %1187 = vmatprep.subr.bf16.mxu1 %v1280_v9 }
  0x78   : > { %1147 = vmatpush3.bf16.msra.mxu0 %v1280_v9  ;;  %1195 = vmatpush3.bf16.msra.mxu1 %v1280_v9 }
  0x7b   : > { %1149 = vmatmul.mubr.bf16.vlgmr.msra.gmra.mrb[0].mxu0 %v1283_v10  ;;  %1165 = vmatmul.mubr.bf16.vlgmr.msra.gmra.mrb[0].mxu1 %v1284_v11 }
  0x7c   : > { %1152 = vmatprep.mubr.bf16.mxu0 %v1285_v12  ;;  %1168 = vmatprep.mubr.bf16.mxu1 %v1286_v13 }
  0x83   : > { %1153 = vmatmul.mubr.bf16.gmra.mrb[4].mxu0 %v1287_v14  ;;  %1169 = vmatmul.mubr.bf16.gmra.mrb[4].mxu1 %v1288_v15 }
  0x84   : > { %1156 = vmatprep.mubr.bf16.mxu0 %v1289_v16  ;;  %1172 = vmatprep.mubr.bf16.mxu1 %v1290_v17 }
  0x8b   : > { %1157 = vmatmul.mubr.bf16.gmra.mrb[8].mxu0 %v1291_v18  ;;  %1173 = vmatmul.mubr.bf16.gmra.mrb[8].mxu1 %v1292_v19 }
  0x8c   : > { %1160 = vmatprep.mubr.bf16.mxu0 %v1293_v20  ;;  %1176 = vmatprep.mubr.bf16.mxu1 %v1294_v21 }
  0x93   : > { %1161 = vmatmul.mubr.bf16.gmra.mrb[12].mxu0 %v1295_v22  ;;  %1177 = vmatmul.mubr.bf16.gmra.mrb[12].mxu1 %v1296_v23 }
 0x14e   : > { %v1150_v25 = vpop.f32.mrb[0].mxu0  ;;  %v1166_v26 = vpop.f32.mrb[0].mxu1 }
 0x14f   : > { %v799_v27 = vadd.f32 %v1150_v25, %v1661_v24  ;;  %v815_v28 = vadd.f32 %v1166_v26, %v1661_v24  ;;  %v564_v29 = vpop.f32.mrb[1].mxu0  ;;  %v628_v30 = vpop.f32.mrb[1].mxu1 }
 0x150   : > { %v797_v31 = vadd.f32 %v1661_v24, %v564_v29  ;;  %v813_v32 = vadd.f32 %v1661_v24, %v628_v30  ;;  %v1151_v33 = vpop.f32.mrb[2].mxu0  ;;  %v1167_v34 = vpop.f32.mrb[2].mxu1 }
 0x151   : > { %v831_v35 = vmul.f32 0.1, %v799_v27  ;;  %v847_v36 = vmul.f32 0.1, %v815_v28  ;;  %v800_v37 = vadd.f32 %v1151_v33, %v1661_v24  ;;  %v816_v38 = vadd.f32 %v1167_v34, %v1661_v24  ;;  %v567_v39 = vpop.f32.mrb[3].mxu0  ;;  %v631_v40 = vpop.f32.mrb[3].mxu1 }
 0x152   : > { %v829_v41 = vmul.f32 0.1, %v797_v31  ;;  %v845_v42 = vmul.f32 0.1, %v813_v32  ;;  %v798_v43 = vadd.f32 %v1661_v24, %v567_v39  ;;  %v814_v44 = vadd.f32 %v1661_v24, %v631_v40 }
 0x153   : > { %v863_v45 = vmax.f32 %v799_v27, %v831_v35  ;;  %v879_v46 = vmax.f32 %v815_v28, %v847_v36  ;;  %v832_v47 = vmul.f32 0.1, %v800_v37  ;;  %v848_v48 = vmul.f32 0.1, %v816_v38 }
 0x154   : > { %v861_v49 = vmax.f32 %v797_v31, %v829_v41  ;;  %v877_v50 = vmax.f32 %v813_v32, %v845_v42  ;;  %v830_v51 = vmul.f32 0.1, %v798_v43  ;;  %v846_v52 = vmul.f32 0.1, %v814_v44 }
 0x155   : > { %895 = vst [vmem:[%s1672_s10 + $0x10] sm:$0xff] %v863_v45  ;;  %911 = vst [vmem:[%s1672_s10 + $0x90] sm:$0xff] %v879_v46  ;;  %v864_v53 = vmax.f32 %v800_v37, %v832_v47  ;;  %v880_v54 = vmax.f32 %v816_v38, %v848_v48 }
 0x156   : > { %893 = vst [vmem:[%s1672_s10] sm:$0xff] %v861_v49  ;;  %909 = vst [vmem:[%s1672_s10 + $0x80] sm:$0xff] %v877_v50  ;;  %v862_v55 = vmax.f32 %v798_v43, %v830_v51  ;;  %v878_v56 = vmax.f32 %v814_v44, %v846_v52  ;;  %v1154_v57 = vpop.f32.mrb[4].mxu0  ;;  %v1170_v58 = vpop.f32.mrb[4].mxu1 }
 0x157   : > { %896 = vst [vmem:[%s1672_s10 + $0x18] sm:$0xff] %v864_v53  ;;  %912 = vst [vmem:[%s1672_s10 + $0x98] sm:$0xff] %v880_v54  ;;  %v803_v59 = vadd.f32 %v1154_v57, %v1661_v24  ;;  %v819_v60 = vadd.f32 %v1170_v58, %v1661_v24  ;;  %v580_v61 = vpop.f32.mrb[5].mxu0  ;;  %v644_v62 = vpop.f32.mrb[5].mxu1 }
 0x158   : > { %894 = vst [vmem:[%s1672_s10 + $0x8] sm:$0xff] %v862_v55  ;;  %910 = vst [vmem:[%s1672_s10 + $0x88] sm:$0xff] %v878_v56  ;;  %v801_v63 = vadd.f32 %v1661_v24, %v580_v61  ;;  %v817_v0 = vadd.f32 %v1661_v24, %v644_v62  ;;  %v1155_v1 = vpop.f32.mrb[6].mxu0  ;;  %v1171_v2 = vpop.f32.mrb[6].mxu1 }
 0x159   : > { %v835_v3 = vmul.f32 0.1, %v803_v59  ;;  %v851_v4 = vmul.f32 0.1, %v819_v60  ;;  %v804_v5 = vadd.f32 %v1155_v1, %v1661_v24  ;;  %v820_v6 = vadd.f32 %v1171_v2, %v1661_v24  ;;  %v583_v7 = vpop.f32.mrb[7].mxu0  ;;  %v647_v8 = vpop.f32.mrb[7].mxu1 }
 0x15a   : > { %v833_v9 = vmul.f32 0.1, %v801_v63  ;;  %v849_v10 = vmul.f32 0.1, %v817_v0  ;;  %v802_v11 = vadd.f32 %v1661_v24, %v583_v7  ;;  %v818_v12 = vadd.f32 %v1661_v24, %v647_v8 }
 0x15b   : > { %v867_v13 = vmax.f32 %v803_v59, %v835_v3  ;;  %v883_v14 = vmax.f32 %v819_v60, %v851_v4  ;;  %v836_v15 = vmul.f32 0.1, %v804_v5  ;;  %v852_v16 = vmul.f32 0.1, %v820_v6 }
 0x15c   : > { %v865_v17 = vmax.f32 %v801_v63, %v833_v9  ;;  %v881_v18 = vmax.f32 %v817_v0, %v849_v10  ;;  %v834_v19 = vmul.f32 0.1, %v802_v11  ;;  %v850_v20 = vmul.f32 0.1, %v818_v12 }
 0x15d   : > { %899 = vst [vmem:[%s1672_s10 + $0x30] sm:$0xff] %v867_v13  ;;  %915 = vst [vmem:[%s1672_s10 + $0xb0] sm:$0xff] %v883_v14  ;;  %v868_v21 = vmax.f32 %v804_v5, %v836_v15  ;;  %v884_v22 = vmax.f32 %v820_v6, %v852_v16 }
 0x15e   : > { %897 = vst [vmem:[%s1672_s10 + $0x20] sm:$0xff] %v865_v17  ;;  %913 = vst [vmem:[%s1672_s10 + $0xa0] sm:$0xff] %v881_v18  ;;  %v866_v23 = vmax.f32 %v802_v11, %v834_v19  ;;  %v882_v25 = vmax.f32 %v818_v12, %v850_v20  ;;  %v1158_v26 = vpop.f32.mrb[8].mxu0  ;;  %v1174_v27 = vpop.f32.mrb[8].mxu1 }
 0x15f   : > { %900 = vst [vmem:[%s1672_s10 + $0x38] sm:$0xff] %v868_v21  ;;  %916 = vst [vmem:[%s1672_s10 + $0xb8] sm:$0xff] %v884_v22  ;;  %v807_v28 = vadd.f32 %v1158_v26, %v1661_v24  ;;  %v823_v29 = vadd.f32 %v1174_v27, %v1661_v24  ;;  %v596_v30 = vpop.f32.mrb[9].mxu0  ;;  %v660_v31 = vpop.f32.mrb[9].mxu1 }
 0x160   : > { %898 = vst [vmem:[%s1672_s10 + $0x28] sm:$0xff] %v866_v23  ;;  %914 = vst [vmem:[%s1672_s10 + $0xa8] sm:$0xff] %v882_v25  ;;  %v805_v32 = vadd.f32 %v1661_v24, %v596_v30  ;;  %v821_v33 = vadd.f32 %v1661_v24, %v660_v31  ;;  %v1159_v34 = vpop.f32.mrb[10].mxu0  ;;  %v1175_v35 = vpop.f32.mrb[10].mxu1 }
 0x161   : > { %v839_v36 = vmul.f32 0.1, %v807_v28  ;;  %v855_v37 = vmul.f32 0.1, %v823_v29  ;;  %v808_v38 = vadd.f32 %v1159_v34, %v1661_v24  ;;  %v824_v39 = vadd.f32 %v1175_v35, %v1661_v24  ;;  %v599_v40 = vpop.f32.mrb[11].mxu0  ;;  %v663_v41 = vpop.f32.mrb[11].mxu1 }
 0x162   : > { %v837_v42 = vmul.f32 0.1, %v805_v32  ;;  %v853_v43 = vmul.f32 0.1, %v821_v33  ;;  %v806_v44 = vadd.f32 %v1661_v24, %v599_v40  ;;  %v822_v45 = vadd.f32 %v1661_v24, %v663_v41 }
 0x163   : > { %v871_v46 = vmax.f32 %v807_v28, %v839_v36  ;;  %v887_v47 = vmax.f32 %v823_v29, %v855_v37  ;;  %v840_v48 = vmul.f32 0.1, %v808_v38  ;;  %v856_v49 = vmul.f32 0.1, %v824_v39 }
 0x164   : > { %v869_v50 = vmax.f32 %v805_v32, %v837_v42  ;;  %v885_v51 = vmax.f32 %v821_v33, %v853_v43  ;;  %v838_v52 = vmul.f32 0.1, %v806_v44  ;;  %v854_v53 = vmul.f32 0.1, %v822_v45 }
 0x165   : > { %903 = vst [vmem:[%s1672_s10 + $0x50] sm:$0xff] %v871_v46  ;;  %919 = vst [vmem:[%s1672_s10 + $0xd0] sm:$0xff] %v887_v47  ;;  %v872_v54 = vmax.f32 %v808_v38, %v840_v48  ;;  %v888_v55 = vmax.f32 %v824_v39, %v856_v49 }
 0x166   : > { %901 = vst [vmem:[%s1672_s10 + $0x40] sm:$0xff] %v869_v50  ;;  %917 = vst [vmem:[%s1672_s10 + $0xc0] sm:$0xff] %v885_v51  ;;  %v870_v56 = vmax.f32 %v806_v44, %v838_v52  ;;  %v886_v57 = vmax.f32 %v822_v45, %v854_v53  ;;  %v1162_v58 = vpop.f32.mrb[12].mxu0  ;;  %v1178_v59 = vpop.f32.mrb[12].mxu1 }
 0x167   : > { %904 = vst [vmem:[%s1672_s10 + $0x58] sm:$0xff] %v872_v54  ;;  %920 = vst [vmem:[%s1672_s10 + $0xd8] sm:$0xff] %v888_v55  ;;  %v811_v60 = vadd.f32 %v1162_v58, %v1661_v24  ;;  %v827_v61 = vadd.f32 %v1178_v59, %v1661_v24  ;;  %v612_v62 = vpop.f32.mrb[13].mxu0  ;;  %v676_v63 = vpop.f32.mrb[13].mxu1 }
 0x168   : > { %902 = vst [vmem:[%s1672_s10 + $0x48] sm:$0xff] %v870_v56  ;;  %918 = vst [vmem:[%s1672_s10 + $0xc8] sm:$0xff] %v886_v57  ;;  %v809_v0 = vadd.f32 %v1661_v24, %v612_v62  ;;  %v825_v1 = vadd.f32 %v1661_v24, %v676_v63  ;;  %v1163_v2 = vpop.f32.mrb[14].mxu0  ;;  %v1179_v3 = vpop.f32.mrb[14].mxu1 }
 0x169   : > { %v843_v4 = vmul.f32 0.1, %v811_v60  ;;  %v859_v5 = vmul.f32 0.1, %v827_v61  ;;  %v812_v6 = vadd.f32 %v1163_v2, %v1661_v24  ;;  %v828_v7 = vadd.f32 %v1179_v3, %v1661_v24  ;;  %v615_v8 = vpop.f32.mrb[15].mxu0  ;;  %v679_v9 = vpop.f32.mrb[15].mxu1 }
 0x16a   : > { %v841_v10 = vmul.f32 0.1, %v809_v0  ;;  %v857_v11 = vmul.f32 0.1, %v825_v1  ;;  %v810_v12 = vadd.f32 %v1661_v24, %v615_v8  ;;  %v826_v13 = vadd.f32 %v1661_v24, %v679_v9 }
 0x16b   : > { %v875_v14 = vmax.f32 %v811_v60, %v843_v4  ;;  %v891_v15 = vmax.f32 %v827_v61, %v859_v5  ;;  %v844_v16 = vmul.f32 0.1, %v812_v6  ;;  %v860_v17 = vmul.f32 0.1, %v828_v7 }
 0x16c   : > { %v873_v18 = vmax.f32 %v809_v0, %v841_v10  ;;  %v889_v19 = vmax.f32 %v825_v1, %v857_v11  ;;  %v842_v20 = vmul.f32 0.1, %v810_v12  ;;  %v858_v21 = vmul.f32 0.1, %v826_v13 }
 0x16d   : > { %907 = vst [vmem:[%s1672_s10 + $0x70] sm:$0xff] %v875_v14  ;;  %923 = vst [vmem:[%s1672_s10 + $0xf0] sm:$0xff] %v891_v15  ;;  %v876_v24 = vmax.f32 %v812_v6, %v844_v16  ;;  %v892_v22 = vmax.f32 %v828_v7, %v860_v17 }
 0x16e   : > { %905 = vst [vmem:[%s1672_s10 + $0x60] sm:$0xff] %v873_v18  ;;  %921 = vst [vmem:[%s1672_s10 + $0xe0] sm:$0xff] %v889_v19  ;;  %v874_v23 = vmax.f32 %v810_v12, %v842_v20  ;;  %v890_v25 = vmax.f32 %v826_v13, %v858_v21 }
 0x16f   : > { %908 = vst [vmem:[%s1672_s10 + $0x78] sm:$0xff] %v876_v24  ;;  %924 = vst [vmem:[%s1672_s10 + $0xf8] sm:$0xff] %v892_v22 }
 0x170   : > { %906 = vst [vmem:[%s1672_s10 + $0x68] sm:$0xff] %v874_v23  ;;  %922 = vst [vmem:[%s1672_s10 + $0xe8] sm:$0xff] %v890_v25 }
 0x171   : > { %1368 = shalt.err (!%p1365_p5)
}
 0x172   : > { %s1369_s29 = scalar_lea.hbm %s1729_s19, 4096  ;;  %s1373_s20 = scalar_lea.hbm %s1789_s3, 8192 }
 0x173   : > { %p1370_p9 = scmp.ne.s32.totalorder %s1729_s19, %s1369_s29  ;;  %p1374_p3 = scmp.lt.u32.totalorder %s1729_s19, %s1789_s3 }
 0x174   : > { %p1375_p7 = scmp.lt.u32.totalorder %s1373_s20, %s1369_s29  ;;  %p1377_p4 = scmp.lt.u32.totalorder %s1369_s29, %s1729_s19 }
 0x175   : > { %p1371_p1 = pnand %p1370_p9, %p1569_p10 }
 0x176   : > { %p1376_p13 = por %p1375_p7, %p1374_p3 }
 0x177   : > { %p1372_p2 = pneg %p1371_p1 }
 0x178   : > { %p1378_p6 = por %p1377_p4, %p1376_p13 }
 0x17a   : > { %p1379_p8 = pnand %p1378_p6, %p1372_p2 }
 0x17c   : > { %1382 = shalt.err (!%p1379_p8)
}
 0x17d   : > { %s1448_s10 = smov 128   ;;  %s1449_s11 = smov 8  }
 0x17e   : > { %1202 = dma.vmem_to_hbm [thread:$0]  (%p1569_p10), %s1731_s9, 4096, %s1729_s19, %s926_s25, %s1448_s10, %s1448_s10, %s1449_s11  }
 0x17f PF: > { %s957_s15 = sand.u32 1, %s1421_s12   ;;  %p1807_p12 = scmp.ne.s32.totalorder %s1797_s23, 0 }
 0x180   : > { %p1808_p11 = scmp.ge.s32.totalorder %s1441_s17, 2  ;;  %s958_s18 = scalar_lea.sflag [#allocation5], %s957_s15 }
 0x182   : > { %p1213_p0 = pnand %p1808_p11, %p1807_p12 }
 0x184   : > { %1416 = dma.done.wait (!%p1213_p0), %s958_s18, 4096  }
 0x185   : > { %1418 = vsyncadd (!%p1213_p0), %s958_s18, 4294963200  ;;  %s20_s17 = sadd.s32 1, %s1441_s17   ;;  %s1809_s12 = smov %s1425_s13 }
 0x186   : > { %p17_p5 = scmp.ge.s32.totalorder %s20_s17, 4   ;;  %s1810_s13 = smov %s1429_s14 }
 0x187   : > { %s1811_s14 = smov %s1578_s5  ;;  %s1812_s15 = smov %s1437_s16 }
 0x188   : > { %s1813_s16 = smov %s1815_s28  ;;  %19 = sbr.rel (!%p17_p5) target bundleno = 7 (0x7), region = 93 }
 0x18f   :  { %963 = vsyncpa [#allocation4], 1 }
 0x190   :  { %965 = vsyncpa [#allocation4 + $0x1], 1 }
 0x191   :  { %966 = vsyncpa [#allocation7], 1 }
 0x192   :  { %967 = vsyncpa [#allocation5], 1 }
 0x193   :  { %969 = vsyncpa [#allocation5 + $0x1], 1 }

</bundles_post_ra>
